<compile_context>
chip_gen: v6e
topology: v6e:2x2x1
jax: 0.10.0
libtpu: 0.0.40
codegen_flags: <defaults>
</compile_context>

<pallas_src>
import functools

import jax
import jax.numpy as jnp
from jax.experimental import pallas as pl
from jax.experimental.pallas import tpu as pltpu  # noqa: F401  (TPU backend)

LANE = 128      # lane width of a vreg
SUBLANE = 8     # sublane width of a vreg


def _round_up(n, m):
    return ((n + m - 1) // m) * m


def mlp_kernel(x_ref, w1_ref, b1_ref, w2_ref, b2_ref, o_ref):
    # fc1 on the MXU (bf16 operands, f32 accumulation).
    h = jnp.dot(x_ref[...], w1_ref[...], preferred_element_type=jnp.float32)
    # Bias add + ReLU on the VPU (f32). Padded hidden columns have zero
    # weights and zero bias, so they stay exactly 0 and contribute nothing
    # to fc2.
    h = jnp.maximum(h + b1_ref[...], 0.0)
    # fc2 on the MXU; cast the activation back to the bf16 operand dtype.
    out = jnp.dot(h.astype(w2_ref.dtype), w2_ref[...],
                  preferred_element_type=jnp.float32)
    # Output is f32 == accumulator dtype: no astype needed on store.
    o_ref[...] = out + b2_ref[...]


def pack_params(w1, b1, w2, b2, compute_dtype=jnp.bfloat16):
    """One-time packing of PyTorch-layout params (hoisted off the call path).

    w1: (H, In); b1: (1, H) or (H,); w2: (C, H); b2: (1, C) or (C,)
    Returns lane-padded, pre-transposed weights in `compute_dtype` and
    lane-padded f32 biases.
    """
    H, In = w1.shape
    C = w2.shape[0]
    In_p = _round_up(In, LANE)
    H_p = _round_up(H, LANE)
    C_p = _round_up(C, LANE)

    w1_p = jnp.pad(w1.T.astype(compute_dtype), ((0, In_p - In), (0, H_p - H)))
    b1_p = jnp.pad(jnp.reshape(b1, (1, -1)).astype(jnp.float32),
                   ((0, 0), (0, H_p - H)))
    w2_p = jnp.pad(w2.T.astype(compute_dtype), ((0, H_p - H), (0, C_p - C)))
    b2_p = jnp.pad(jnp.reshape(b2, (1, -1)).astype(jnp.float32),
                   ((0, 0), (0, C_p - C)))
    return (w1_p, b1_p, w2_p, b2_p), (In, H, C)


@functools.partial(jax.jit, static_argnames=("dims",))
def neural_net_forward(x, packed, dims):
    """relu(x @ W1.T + b1) @ W2.T + b2 using pre-packed params.

    x: (B, In) f32; packed: output of pack_params; dims: (In, H, C).
    Returns (B, C) float32.
    """
    w1_p, b1_p, w2_p, b2_p = packed
    In, H, C = dims
    B = x.shape[0]
    In_p, H_p = w1_p.shape
    C_p = w2_p.shape[1]
    B_p = _round_up(B, SUBLANE)

    # Per-call input prep: one cast + one pad (zero rows/cols; padded batch
    # rows produce garbage-free rows that are sliced off below).
    x_p = jnp.pad(x.astype(w1_p.dtype), ((0, B_p - B), (0, In_p - In)))

    flops = 2 * B_p * In_p * H_p + 2 * B_p * H_p * C_p
    bytes_accessed = (
        x_p.size * x_p.dtype.itemsize
        + w1_p.size * w1_p.dtype.itemsize + b1_p.size * 4
        + w2_p.size * w2_p.dtype.itemsize + b2_p.size * 4
        + B_p * C_p * 4
    )

    out_p = pl.pallas_call(
        mlp_kernel,
        out_shape=jax.ShapeDtypeStruct((B_p, C_p), jnp.float32),
        in_specs=[
            pl.BlockSpec((B_p, In_p), lambda: (0, 0)),
            pl.BlockSpec((In_p, H_p), lambda: (0, 0)),
            pl.BlockSpec((1, H_p), lambda: (0, 0)),
            pl.BlockSpec((H_p, C_p), lambda: (0, 0)),
            pl.BlockSpec((1, C_p), lambda: (0, 0)),
        ],
        out_specs=pl.BlockSpec((B_p, C_p), lambda: (0, 0)),
        cost_estimate=pl.CostEstimate(flops=flops, transcendentals=0,
                                      bytes_accessed=bytes_accessed),
    )(x_p, w1_p, b1_p, w2_p, b2_p)

    # Slice away lane/sublane padding (callers that tolerate padding could
    # consume out_p directly and skip this copy).
    return out_p[:B, :C]


def init_params(key, input_size, hidden_size, num_classes):
    # Deterministic init mimicking nn.Linear's default (uniform +-1/sqrt(fan_in)).
    k1, k2, k3, k4 = jax.random.split(key, 4)
    lim1 = 1.0 / (input_size ** 0.5)
    lim2 = 1.0 / (hidden_size ** 0.5)
    w1 = jax.random.uniform(k1, (hidden_size, input_size), jnp.float32, -lim1, lim1)
    b1 = jax.random.uniform(k2, (1, hidden_size), jnp.float32, -lim1, lim1)
    w2 = jax.random.uniform(k3, (num_classes, hidden_size), jnp.float32, -lim2, lim2)
    b2 = jax.random.uniform(k4, (1, num_classes), jnp.float32, -lim2, lim2)
    return w1, b1, w2, b2


if __name__ == "__main__":
    batch = 8
    input_size = 32
    hidden_size = 64
    num_classes = 16

    key = jax.random.PRNGKey(0)
    kx, kp = jax.random.split(key)
    x = jax.random.normal(kx, (batch, input_size), jnp.float32)
    w1, b1, w2, b2 = init_params(kp, input_size, hidden_size, num_classes)

    # One-time packing (off the per-call path).
    packed, dims = pack_params(w1, b1, w2, b2)
    packed = jax.tree_util.tree_map(jax.block_until_ready, packed)

    out = neural_net_forward(x, packed, dims)
    jax.block_until_ready(out)

    # Pure-JAX f32 reference (original nn.Linear semantics). Kernel uses bf16
    # operands with f32 accumulation, so tolerances are bf16-appropriate.
    ref = jnp.maximum(x @ w1.T + b1, 0.0) @ w2.T + b2
    assert out.shape == (batch, num_classes)
    assert jnp.allclose(out, ref, atol=5e-2, rtol=5e-2), (
        float(jnp.max(jnp.abs(out - ref))))

    print("KERNEL_OK")
</pallas_src>

<mosaic_0001>
module attributes {stable_mosaic.version = 11 : i64} {
  func.func @mlp_kernel(%arg0: memref<8x128xbf16, #tpu.memory_space<vmem>>, %arg1: memref<128x128xbf16, #tpu.memory_space<vmem>>, %arg2: memref<1x128xf32, #tpu.memory_space<vmem>>, %arg3: memref<128x128xbf16, #tpu.memory_space<vmem>>, %arg4: memref<1x128xf32, #tpu.memory_space<vmem>>, %arg5: memref<8x128xf32, #tpu.memory_space<vmem>>) attributes {dimension_semantics = [], scalar_prefetch = 0 : i64, scratch_operands = 0 : i64, tpu.core_type = #tpu.core_type<tc>} {
    %c0 = arith.constant 0 : index
    %c0_0 = arith.constant 0 : index
    %0 = vector.load %arg0[%c0, %c0_0] : memref<8x128xbf16, #tpu.memory_space<vmem>>, vector<8x128xbf16>
    %c0_1 = arith.constant 0 : index
    %c0_2 = arith.constant 0 : index
    %1 = vector.load %arg1[%c0_1, %c0_2] : memref<128x128xbf16, #tpu.memory_space<vmem>>, vector<128x128xbf16>
    %cst = arith.constant dense<0.000000e+00> : vector<8x128xf32>
    %2 = tpu.matmul %0, %1, %cst {dimension_numbers = #tpu.dot_dimension_numbers<[1], [0], [0], [1], [0, 0, 1, 1], [], []>} : vector<8x128xbf16>, vector<128x128xbf16>, vector<8x128xf32> -> vector<8x128xf32>
    %c0_3 = arith.constant 0 : index
    %c0_4 = arith.constant 0 : index
    %3 = vector.load %arg2[%c0_3, %c0_4] : memref<1x128xf32, #tpu.memory_space<vmem>>, vector<1x128xf32>
    %4 = vector.broadcast %3 : vector<1x128xf32> to vector<8x128xf32>
    %5 = arith.addf %2, %4 : vector<8x128xf32>
    %cst_5 = arith.constant 0.000000e+00 : f32
    %6 = vector.broadcast %cst_5 : f32 to vector<8x128xf32>
    %7 = arith.maximumf %5, %6 : vector<8x128xf32>
    %8 = arith.truncf %7 : vector<8x128xf32> to vector<8x128xbf16>
    %c0_6 = arith.constant 0 : index
    %c0_7 = arith.constant 0 : index
    %9 = vector.load %arg3[%c0_6, %c0_7] : memref<128x128xbf16, #tpu.memory_space<vmem>>, vector<128x128xbf16>
    %cst_8 = arith.constant dense<0.000000e+00> : vector<8x128xf32>
    %10 = tpu.matmul %8, %9, %cst_8 {dimension_numbers = #tpu.dot_dimension_numbers<[1], [0], [0], [1], [0, 0, 1, 1], [], []>} : vector<8x128xbf16>, vector<128x128xbf16>, vector<8x128xf32> -> vector<8x128xf32>
    %c0_9 = arith.constant 0 : index
    %c0_10 = arith.constant 0 : index
    %11 = vector.load %arg4[%c0_9, %c0_10] : memref<1x128xf32, #tpu.memory_space<vmem>>, vector<1x128xf32>
    %12 = vector.broadcast %11 : vector<1x128xf32> to vector<8x128xf32>
    %13 = arith.addf %10, %12 : vector<8x128xf32>
    %c0_11 = arith.constant 0 : index
    %c0_12 = arith.constant 0 : index
    %14 = vector.load %arg5[%c0_11, %c0_12] : memref<8x128xf32, #tpu.memory_space<vmem>>, vector<8x128xf32>
    tpu.vector_store %arg5[%c0_11, %c0_12], %13 {strides = array<i32>} : memref<8x128xf32, #tpu.memory_space<vmem>>, vector<8x128xf32>,
    return
  }
}

</mosaic_0001>

<bundles_post_ra>
// kernel: neural_net_forward.1
= control target key start
LH: loop header
LB: loop body
LE: loop exit
PB: predicated region body
PF: predicated region fallthrough
CT: control target
= control target key end

     0   :  { %10 = vsyncpa [#allocation3], 0  ;;  %s512_s0 = inlined_call_operand.vmem [shape: bf16[8,128], index: 0, kind: input, shape index: {}]   ;;  %s513_s1 = inlined_call_operand.hbm [shape: bf16[128,128], index: 1, kind: input, shape index: {}]   ;;  %s514_s2 = inlined_call_operand.vmem [shape: f32[1,128], index: 2, kind: input, shape index: {}]   ;;  %s515_s3 = inlined_call_operand.hbm [shape: bf16[128,128], index: 3, kind: input, shape index: {}]   ;;  %s516_s4 = inlined_call_operand.vmem [shape: f32[1,128], index: 4, kind: input, shape index: {}]   ;;  %s517_s5 = inlined_call_operand.hbm [shape: f32[8,128], index: 5, kind: output, shape index: {}]  }
   0x1   :  { %11 = vsyncpa [#allocation6], 0 }
   0x2   :  { %12 = vsyncpa [#allocation4], 0  ;;  %s457_s18 = smov [#allocation2]  }
   0x3   :  { %s20_s19 = sshll.u32 %s457_s18, 4  ;;  %s21_s19 = int_to_ptr.vmem [resolvable:$true] %s20_s19 }
   0x4   :  { %s399_s20 = scalar_lea.vmem %s21_s19, 1024  ;;  %p404_p1 = scmp.lt.s32.totalorder %s21_s19, %s21_s19 }
   0x5   :  { %p400_p0 = scmp.ne.s32.totalorder %s21_s19, %s399_s20  ;;  %p405_p2 = scmp.lt.s32.totalorder %s399_s20, %s399_s20 }
   0x7   :  { %p406_p3 = por %p405_p2, %p404_p1 }
   0x9   :  { %p407_p4 = pnand %p406_p3, %p400_p0 }
   0xb   :  { %410 = shalt.err (!%p407_p4)
}
   0xc   :  { %s458_s21 = smov 64   ;;  %s459_s22 = smov 4  }
   0xd   :  { %26 = dma.hbm_to_vmem [thread:$0]  %s513_s1, 1024, %s21_s19, [#allocation3], %s458_s21, %s458_s21, %s459_s22  }
   0xe   :  { %s460_s25 = smov [#allocation5]  }
   0xf   :  { %s34_s26 = sshll.u32 %s460_s25, 4  ;;  %s35_s26 = int_to_ptr.vmem [resolvable:$true] %s34_s26 }
  0x10   :  { %s419_s27 = scalar_lea.vmem %s35_s26, 1024  ;;  %p424_p6 = scmp.lt.s32.totalorder %s35_s26, %s35_s26 }
  0x11   :  { %p420_p5 = scmp.ne.s32.totalorder %s35_s26, %s419_s27  ;;  %p425_p7 = scmp.lt.s32.totalorder %s419_s27, %s419_s27 }
  0x13   :  { %p426_p8 = por %p425_p7, %p424_p6 }
  0x15   :  { %p427_p9 = pnand %p426_p8, %p420_p5 }
  0x17   :  { %430 = shalt.err (!%p427_p9)
}
  0x18   :  { %40 = dma.hbm_to_vmem [thread:$0]  %s515_s3, 1024, %s35_s26, [#allocation6], %s458_s21, %s458_s21, %s459_s22  }
  0x19   :  { %451 = dma.done.wait [#allocation3], 1024  }
  0x1a   :  { %452 = vsyncadd [#allocation3], 4294966272 }
  0x1b   :  { %453 = dma.done.wait [#allocation6], 1024  }
  0x1c   :  { %454 = vsyncadd [#allocation6], 4294966272  ;;  %v461_v0 = vmov 0.0   ;;  %vm462_vm0 = vmmov 0   ;;  %v375_v1 = vld [vmem:[#allocation2 + $0x38] sm:$0xff]   ;;  %v376_v2 = vld [vmem:[#allocation2 + $0x30] sm:$0xff]  }
  0x1d   :  { %328 = vmatprep.subr.bf16.mxu0 %v461_v0  ;;  %344 = vmatprep.mubr.msk.bf16.mxu0 %vm462_vm0, %v461_v0  ;;  %v377_v3 = vld [vmem:[#allocation2 + $0x28] sm:$0xff]   ;;  %v383_v4 = vld [vmem:[#allocation5 + $0x38] sm:$0xff]   ;;  %v378_v5 = vld [vmem:[#allocation2 + $0x20] sm:$0xff]   ;;  %s463_s8 = smov [#allocation7]  }
  0x1e   :  { %348 = vmatprep.subr.bf16.mxu1 %v461_v0  ;;  %364 = vmatprep.mubr.msk.bf16.mxu1 %vm462_vm0, %v461_v0  ;;  %v384_v6 = vld [vmem:[#allocation5 + $0x30] sm:$0xff]   ;;  %v379_v7 = vld [vmem:[#allocation2 + $0x18] sm:$0xff]   ;;  %v385_v8 = vld [vmem:[#allocation5 + $0x28] sm:$0xff]   ;;  %s282_s9 = sshll.u32 %s463_s8, 4  ;;  %s283_s9 = int_to_ptr.vmem [resolvable:$true] %s282_s9 }
  0x1f   :  { %329 = vmatpush3.bf16.msra.mxu0 %v375_v1  ;;  %349 = vmatpush3.bf16.msra.mxu1 %v383_v4  ;;  %v380_v9 = vld [vmem:[#allocation2 + $0x10] sm:$0xff]   ;;  %v386_v10 = vld [vmem:[#allocation5 + $0x20] sm:$0xff]   ;;  %v381_v11 = vld [vmem:[#allocation2 + $0x8] sm:$0xff]   ;;  %p436_p11 = scmp.lt.s32.totalorder %s283_s9, %s283_s9 }
  0x20   :  { %330 = vmatprep.subr.bf16.mxu0 %v461_v0  ;;  %350 = vmatprep.subr.bf16.mxu1 %v461_v0  ;;  %v387_v12 = vld [vmem:[#allocation5 + $0x18] sm:$0xff]   ;;  %v382_v13 = vld [vmem:[#allocation2] sm:$0xff]   ;;  %v388_v14 = vld [vmem:[#allocation5 + $0x10] sm:$0xff]  }
  0x21   :  { %v50_v15 = vld [vmem:[%s512_s0] sm:$0xf]  ;;  %v389_v16 = vld [vmem:[#allocation5 + $0x8] sm:$0xff]  }
  0x22   :  { %v390_v17 = vld [vmem:[#allocation5] sm:$0xff]  }
  0x23   :  { %331 = vmatpush3.bf16.msra.mxu0 %v376_v2  ;;  %351 = vmatpush3.bf16.msra.mxu1 %v384_v6  ;;  %v292_v18 = vld [vmem:[%s514_s2] ss:$0 sm:$0xff]  ;;  %s431_s2 = scalar_lea.vmem %s283_s9, 128 }
  0x24   :  { %332 = vmatprep.subr.bf16.mxu0 %v461_v0  ;;  %352 = vmatprep.subr.bf16.mxu1 %v461_v0  ;;  %v301_v26 = vld [vmem:[%s516_s4] ss:$0 sm:$0xff]  ;;  %p432_p10 = scmp.ne.s32.totalorder %s283_s9, %s431_s2  ;;  %p437_p12 = scmp.lt.s32.totalorder %s431_s2, %s431_s2 }
  0x26   :  { %p438_p13 = por %p437_p12, %p436_p11 }
  0x27   :  { %333 = vmatpush3.bf16.msra.mxu0 %v377_v3  ;;  %353 = vmatpush3.bf16.msra.mxu1 %v385_v8 }
  0x28   :  { %334 = vmatprep.subr.bf16.mxu0 %v461_v0  ;;  %354 = vmatprep.subr.bf16.mxu1 %v461_v0  ;;  %p439_p0 = pnand %p438_p13, %p432_p10 }
  0x2b   :  { %335 = vmatpush3.bf16.msra.mxu0 %v378_v5  ;;  %355 = vmatpush3.bf16.msra.mxu1 %v386_v10 }
  0x2c   :  { %336 = vmatprep.subr.bf16.mxu0 %v461_v0  ;;  %356 = vmatprep.subr.bf16.mxu1 %v461_v0 }
  0x2f   :  { %337 = vmatpush3.bf16.msra.mxu0 %v379_v7  ;;  %357 = vmatpush3.bf16.msra.mxu1 %v387_v12 }
  0x30   :  { %338 = vmatprep.subr.bf16.mxu0 %v461_v0  ;;  %358 = vmatprep.subr.bf16.mxu1 %v461_v0 }
  0x33   :  { %339 = vmatpush3.bf16.msra.mxu0 %v380_v9  ;;  %359 = vmatpush3.bf16.msra.mxu1 %v388_v14 }
  0x34   :  { %340 = vmatprep.subr.bf16.mxu0 %v461_v0  ;;  %360 = vmatprep.subr.bf16.mxu1 %v461_v0 }
  0x37   :  { %341 = vmatpush3.bf16.msra.mxu0 %v381_v11  ;;  %361 = vmatpush3.bf16.msra.mxu1 %v389_v16 }
  0x38   :  { %342 = vmatprep.subr.bf16.mxu0 %v461_v0  ;;  %362 = vmatprep.subr.bf16.mxu1 %v461_v0 }
  0x3b   :  { %343 = vmatpush3.bf16.msra.mxu0 %v382_v13  ;;  %363 = vmatpush3.bf16.msra.mxu1 %v390_v17 }
  0x3e   :  { %345 = vmatmul.mubr.bf16.vlgmr.msra.gmra.mxu0 %v50_v15 }
  0xfe   :  { %v156_v19 = vpop.f32.mrf.mxu0 }
  0xff   :  { %v157_v20 = vadd.f32 %v292_v18, %v156_v19 }
 0x100   :  { %v346_v21 = vpop.f32.mrf.mxu0 }
 0x101   :  { %v162_v22 = vmax.f32 %v157_v20, 0.0 }
 0x102   :  { %v159_v23 = vpop.f32.mrf.mxu0 }
 0x103   :  { %v163_v24 = vpack.c.bf16 %v162_v22, %v162_v22 }
 0x104   :  { %v347_v25 = vpop.f32.mrf.mxu0 }
 0x105   :  { %365 = vmatmul.mubr.bf16.vlgmr.msra.gmra.mxu1 %v163_v24 }
 0x1c5   :  { %v269_v27 = vpop.f32.mrf.mxu1 }
 0x1c6   :  { %v270_v28 = vadd.f32 %v301_v26, %v269_v27 }
 0x1c7   :  { %v366_v29 = vpop.f32.mrf.mxu1 }
 0x1c8   :  { %275 = vst [vmem:[#allocation7] sm:$0xff] %v270_v28 }
 0x1c9   :  { %v272_v30 = vpop.f32.mrf.mxu1 }
 0x1ca   :  { %442 = shalt.err (!%p439_p0)
}
 0x1cb   :  { %285 = dma.vmem_to_hbm [thread:$0]  %s283_s9, 128, %s517_s5, [#allocation4]   ;;  %v367_v31 = vpop.f32.mrf.mxu1 }
 0x1cc   :  { %455 = dma.done.wait [#allocation4], 128  }
 0x1cd   :  { %456 = vsyncadd [#allocation4], 4294967168 }
 0x1ce   :  { %289 = vsyncpa [#allocation3], 1 }
 0x1cf   :  { %290 = vsyncpa [#allocation6], 1 }
 0x1d0   :  { %291 = vsyncpa [#allocation4], 1 }

</bundles_post_ra>
